<compile_context>
chip_gen: v7x
topology: tpu7x:2x2x1
jax: 0.10.0
libtpu: 0.0.40
codegen_flags: <defaults>
</compile_context>

<pallas_src>
import jax
import jax.numpy as jnp
from jax.experimental import pallas as pl
from jax.experimental.pallas import tpu as pltpu


def _round_up(x, m):
    return ((x + m - 1) // m) * m


def _row_dim_semantics():
    """CORE_PARALLEL on v7x (2 TCs/chip actually shard the grid); 'parallel' elsewhere."""
    try:
        kind = jax.devices()[0].device_kind.lower()
    except Exception:
        kind = ""
    if "7" in kind:
        return (pltpu.CORE_PARALLEL,)
    return ("parallel",)


def _local_attention_kernel(q_ref, k_ref, woff_ref, boff_ref, waq_ref, wak_ref,
                            batt_ref, sel_ref, o_ref):
    # q_ref, k_ref   : (tm, d_model)      compute dtype (f32 or bf16)
    # woff_ref       : (d_model, 3*HP)    offset weights, column = d*HP + h*P + p
    # boff_ref       : (1, 3*HP)  f32     matching offset bias
    # waq_ref/wak_ref: (d_model, 3*HP)    attention weights (q / k halves) tiled x3
    # batt_ref       : (1, 3*HP)  f32     attention bias tiled x3
    # sel_ref        : (3*HP, 3)  f32     selector with 1/n_head at (d*HP + hp, d)
    q = q_ref[...]
    k = k_ref[...]

    # Two lane-aligned MXU results; f32 accumulation; biases added in f32.
    off = jnp.dot(q, woff_ref[...], preferred_element_type=jnp.float32) + boff_ref[...]
    att3 = (jnp.dot(q, waq_ref[...], preferred_element_type=jnp.float32)
            + jnp.dot(k, wak_ref[...], preferred_element_type=jnp.float32)
            + batt_ref[...])

    # Segmented per-coordinate sum + head mean as one small MXU matmul (f32).
    o_ref[...] = jnp.dot(off * att3, sel_ref[...],
                         preferred_element_type=jnp.float32).astype(o_ref.dtype)


def prepare_local_attention_params(w_off, b_off, w_att, b_att, n_head, n_point,
                                   compute_dtype=jnp.bfloat16):
    """One-time re-layout of PyTorch Linear parameters for the kernel.

    w_off: (H*P*3, d_model), b_off: (H*P*3,)   -- sampling_offsets (out idx h*P*3+p*3+d)
    w_att: (H*P, 2*d_model), b_att: (H*P,)     -- attention_weights
    Matmul weights are cast to `compute_dtype`; biases / selector stay f32.
    """
    HP = n_head * n_point
    d_model = w_off.shape[1]
    assert w_off.shape == (3 * HP, d_model)
    assert w_att.shape == (HP, 2 * d_model)
    assert b_off.shape == (3 * HP,)
    assert b_att.shape == (HP,)

    # Reorder offsets weight so output column = d*HP + h*P + p.
    woff = w_off.reshape(n_head, n_point, 3, d_model)
    woff = jnp.transpose(woff, (2, 0, 1, 3)).reshape(3 * HP, d_model).T       # (d_model, 3HP)
    boff = jnp.transpose(b_off.reshape(n_head, n_point, 3), (2, 0, 1)).reshape(1, 3 * HP)

    # Split attention weight into q/k halves of cat([q, k]) and tile x3 along
    # output columns so `att3` comes out lane-aligned with `off` (no in-kernel
    # slices or lane concatenations).
    watt_q = w_att[:, :d_model].T                                             # (d_model, HP)
    watt_k = w_att[:, d_model:].T                                             # (d_model, HP)
    waq3 = jnp.tile(watt_q, (1, 3))                                           # (d_model, 3HP)
    wak3 = jnp.tile(watt_k, (1, 3))                                           # (d_model, 3HP)
    batt3 = jnp.tile(b_att, 3).reshape(1, 3 * HP)

    # Selector for the segmented (per-coordinate) sum, head-mean folded in.
    coord = jnp.repeat(jnp.arange(3), HP)                                     # (3*HP,)
    sel = (coord[:, None] == jnp.arange(3)[None, :]).astype(jnp.float32) / float(n_head)

    return (woff.astype(compute_dtype),
            boff.astype(jnp.float32),
            waq3.astype(compute_dtype),
            wak3.astype(compute_dtype),
            batt3.astype(jnp.float32),
            sel)


def local_attention_pallas(q, k, params, n_head, n_point, tm=1024,
                           vmem_budget_bytes=12 * 1024 * 1024):
    """q, k: (B, L, d_model). params from prepare_local_attention_params.
    Returns (B, L, 3) float32."""
    B, L, d_model = q.shape
    assert k.shape == (B, L, d_model)
    woff, boff, waq3, wak3, batt3, sel = params
    HP = n_head * n_point
    hp3 = 3 * HP
    M = B * L
    out_dtype = jnp.float32

    compute_dtype = woff.dtype
    itemsize = jnp.dtype(compute_dtype).itemsize
    q2 = q.reshape(M, d_model).astype(compute_dtype)   # no-op if already compute_dtype
    k2 = k.reshape(M, d_model).astype(compute_dtype)

    # Sublane granularity for the row tile (packed dtypes want 16/32 rows).
    sub = {4: 8, 2: 16, 1: 32}[itemsize]
    tm = max(sub, (tm // sub) * sub)

    # Tile sizing:
    #   * cap so 2 inputs x 2 pipeline buffers x tm x d_model x itemsize stays
    #     within a conservative budget (fits v5e's 16 MiB scoped default and
    #     v7x's smaller VMEM);
    #   * keep >= 2 grid steps when M allows (pipelining / 2-core split on v7x).
    tm_cap = max(sub, (vmem_budget_bytes // (4 * d_model * itemsize)) // sub * sub)
    tm_eff = max(sub, min(tm, tm_cap, _round_up(pl.cdiv(M, 2), sub)))
    grid = (pl.cdiv(M, tm_eff),)   # no wrapper-side padding; ragged last block OK

    flops = 2 * M * d_model * hp3 * 3 + 2 * M * hp3 * 3
    bytes_accessed = (2 * M * d_model * itemsize          # q, k streamed once
                      + M * 3 * 4                         # output
                      + 3 * d_model * hp3 * itemsize      # resident weights
                      + 2 * hp3 * 4 + hp3 * 3 * 4)        # biases + selector
    cost = pl.CostEstimate(flops=flops, transcendentals=0,
                           bytes_accessed=bytes_accessed)

    out = pl.pallas_call(
        _local_attention_kernel,
        out_shape=jax.ShapeDtypeStruct((M, 3), out_dtype),
        grid_spec=pltpu.PrefetchScalarGridSpec(
            num_scalar_prefetch=0,
            grid=grid,
            in_specs=[
                pl.BlockSpec((tm_eff, d_model), lambda i: (i, 0)),   # q
                pl.BlockSpec((tm_eff, d_model), lambda i: (i, 0)),   # k
                pl.BlockSpec((d_model, hp3), lambda i: (0, 0)),      # woff
                pl.BlockSpec((1, hp3), lambda i: (0, 0)),            # boff
                pl.BlockSpec((d_model, hp3), lambda i: (0, 0)),      # waq3
                pl.BlockSpec((d_model, hp3), lambda i: (0, 0)),      # wak3
                pl.BlockSpec((1, hp3), lambda i: (0, 0)),            # batt3
                pl.BlockSpec((hp3, 3), lambda i: (0, 0)),            # sel
            ],
            out_specs=pl.BlockSpec((tm_eff, 3), lambda i: (i, 0)),
        ),
        compiler_params=pltpu.CompilerParams(
            dimension_semantics=_row_dim_semantics(),
            vmem_limit_bytes=32 * 1024 * 1024),
        cost_estimate=cost,
    )(q2, k2, woff, boff, waq3, wak3, batt3, sel)

    return out.reshape(B, L, 3)


def local_attention_ref(q, k, w_off, b_off, w_att, b_att, n_head, n_point):
    """Pure-JAX reference mirroring the PyTorch forward."""
    B, L, d_model = q.shape
    v = jnp.concatenate([q, k], axis=-1)
    off = (q @ w_off.T + b_off).reshape(B, L, n_head, n_point, 3)
    att = (v @ w_att.T + b_att).reshape(B, L, n_head, n_point, 1)
    flow = jnp.matmul(jnp.swapaxes(off, 3, 4), att)  # (B, L, H, 3, 1)
    flow = jnp.squeeze(flow, axis=-1)                # (B, L, H, 3)
    return jnp.mean(flow, axis=-2)                   # (B, L, 3)


if __name__ == "__main__":
    # Small, deterministic configuration.
    B, L, d_model = 2, 16, 32
    n_head, n_point = 4, 8

    key = jax.random.PRNGKey(0)
    kq, kk, kw1, kb1, kw2, kb2 = jax.random.split(key, 6)

    q = jax.random.normal(kq, (B, L, d_model), dtype=jnp.float32)
    k = jax.random.normal(kk, (B, L, d_model), dtype=jnp.float32)

    # Linear parameter shapes from __init__ (PyTorch convention: (out, in)).
    w_off = 0.1 * jax.random.normal(kw1, (n_head * n_point * 3, d_model), dtype=jnp.float32)
    b_off = 0.1 * jax.random.normal(kb1, (n_head * n_point * 3,), dtype=jnp.float32)
    w_att = 0.1 * jax.random.normal(kw2, (n_head * n_point, 2 * d_model), dtype=jnp.float32)
    b_att = 0.1 * jax.random.normal(kb2, (n_head * n_point,), dtype=jnp.float32)

    ref = local_attention_ref(q, k, w_off, b_off, w_att, b_att, n_head, n_point)

    # f32 path: tight parity with the f32 reference (structural correctness).
    params_f32 = prepare_local_attention_params(
        w_off, b_off, w_att, b_att, n_head, n_point, compute_dtype=jnp.float32)
    out_f32 = jax.block_until_ready(
        local_attention_pallas(q, k, params_f32, n_head, n_point))
    assert out_f32.shape == (B, L, 3)
    assert jnp.allclose(out_f32, ref, atol=1e-4, rtol=1e-4), "f32 mismatch vs reference"

    # bf16 streaming path (default for production): halves HBM input traffic,
    # f32 accumulation; checked at a bf16-appropriate tolerance.
    params_bf16 = prepare_local_attention_params(
        w_off, b_off, w_att, b_att, n_head, n_point, compute_dtype=jnp.bfloat16)
    out_bf16 = jax.block_until_ready(
        local_attention_pallas(q, k, params_bf16, n_head, n_point))
    assert out_bf16.shape == (B, L, 3)
    assert jnp.allclose(out_bf16, ref, atol=5e-2, rtol=5e-2), "bf16 mismatch vs reference"

    print("KERNEL_OK")
</pallas_src>

<mosaic_0001>
module attributes {stable_mosaic.version = 11 : i64} {
  func.func @_local_attention_kernel(%arg0: i32, %arg1: memref<16x32xf32, #tpu.memory_space<vmem>>, %arg2: memref<16x32xf32, #tpu.memory_space<vmem>>, %arg3: memref<32x96xf32, #tpu.memory_space<vmem>>, %arg4: memref<1x96xf32, #tpu.memory_space<vmem>>, %arg5: memref<32x96xf32, #tpu.memory_space<vmem>>, %arg6: memref<32x96xf32, #tpu.memory_space<vmem>>, %arg7: memref<1x96xf32, #tpu.memory_space<vmem>>, %arg8: memref<96x3xf32, #tpu.memory_space<vmem>>, %arg9: memref<16x3xf32, #tpu.memory_space<vmem>>) attributes {dimension_semantics = [#tpu.dimension_semantics<parallel>], iteration_bounds = array<i64: 2>, scalar_prefetch = 0 : i64, scratch_operands = 0 : i64, tpu.core_type = #tpu.core_type<tc>, window_params = [{transform_indices = @transform_0, window_bounds = array<i64: 16, 32>}, {transform_indices = @transform_1, window_bounds = array<i64: 16, 32>}, {pipeline_mode = #tpu.pipeline_mode<synchronous>, transform_indices = @transform_2, window_bounds = array<i64: 32, 96>}, {pipeline_mode = #tpu.pipeline_mode<synchronous>, transform_indices = @transform_3, window_bounds = array<i64: 1, 96>}, {pipeline_mode = #tpu.pipeline_mode<synchronous>, transform_indices = @transform_4, window_bounds = array<i64: 32, 96>}, {pipeline_mode = #tpu.pipeline_mode<synchronous>, transform_indices = @transform_5, window_bounds = array<i64: 32, 96>}, {pipeline_mode = #tpu.pipeline_mode<synchronous>, transform_indices = @transform_6, window_bounds = array<i64: 1, 96>}, {pipeline_mode = #tpu.pipeline_mode<synchronous>, transform_indices = @transform_7, window_bounds = array<i64: 96, 3>}, {transform_indices = @transform_8, window_bounds = array<i64: 16, 3>}]} {
    %c0 = arith.constant 0 : index
    %c0_0 = arith.constant 0 : index
    %0 = vector.load %arg1[%c0, %c0_0] : memref<16x32xf32, #tpu.memory_space<vmem>>, vector<16x32xf32>
    %c0_1 = arith.constant 0 : index
    %c0_2 = arith.constant 0 : index
    %1 = vector.load %arg2[%c0_1, %c0_2] : memref<16x32xf32, #tpu.memory_space<vmem>>, vector<16x32xf32>
    %c0_3 = arith.constant 0 : index
    %c0_4 = arith.constant 0 : index
    %2 = vector.load %arg3[%c0_3, %c0_4] : memref<32x96xf32, #tpu.memory_space<vmem>>, vector<32x96xf32>
    %cst = arith.constant dense<0.000000e+00> : vector<16x96xf32>
    %3 = tpu.matmul %0, %2, %cst {dimension_numbers = #tpu.dot_dimension_numbers<[1], [0], [0], [1], [0, 0, 1, 1], [], []>} : vector<16x32xf32>, vector<32x96xf32>, vector<16x96xf32> -> vector<16x96xf32>
    %c0_5 = arith.constant 0 : index
    %c0_6 = arith.constant 0 : index
    %4 = vector.load %arg4[%c0_5, %c0_6] : memref<1x96xf32, #tpu.memory_space<vmem>>, vector<1x96xf32>
    %5 = vector.broadcast %4 : vector<1x96xf32> to vector<16x96xf32>
    %6 = arith.addf %3, %5 : vector<16x96xf32>
    %c0_7 = arith.constant 0 : index
    %c0_8 = arith.constant 0 : index
    %7 = vector.load %arg5[%c0_7, %c0_8] : memref<32x96xf32, #tpu.memory_space<vmem>>, vector<32x96xf32>
    %cst_9 = arith.constant dense<0.000000e+00> : vector<16x96xf32>
    %8 = tpu.matmul %0, %7, %cst_9 {dimension_numbers = #tpu.dot_dimension_numbers<[1], [0], [0], [1], [0, 0, 1, 1], [], []>} : vector<16x32xf32>, vector<32x96xf32>, vector<16x96xf32> -> vector<16x96xf32>
    %c0_10 = arith.constant 0 : index
    %c0_11 = arith.constant 0 : index
    %9 = vector.load %arg6[%c0_10, %c0_11] : memref<32x96xf32, #tpu.memory_space<vmem>>, vector<32x96xf32>
    %cst_12 = arith.constant dense<0.000000e+00> : vector<16x96xf32>
    %10 = tpu.matmul %1, %9, %cst_12 {dimension_numbers = #tpu.dot_dimension_numbers<[1], [0], [0], [1], [0, 0, 1, 1], [], []>} : vector<16x32xf32>, vector<32x96xf32>, vector<16x96xf32> -> vector<16x96xf32>
    %11 = arith.addf %8, %10 : vector<16x96xf32>
    %c0_13 = arith.constant 0 : index
    %c0_14 = arith.constant 0 : index
    %12 = vector.load %arg7[%c0_13, %c0_14] : memref<1x96xf32, #tpu.memory_space<vmem>>, vector<1x96xf32>
    %13 = vector.broadcast %12 : vector<1x96xf32> to vector<16x96xf32>
    %14 = arith.addf %11, %13 : vector<16x96xf32>
    %15 = arith.mulf %6, %14 : vector<16x96xf32>
    %c0_15 = arith.constant 0 : index
    %c0_16 = arith.constant 0 : index
    %16 = vector.load %arg8[%c0_15, %c0_16] : memref<96x3xf32, #tpu.memory_space<vmem>>, vector<96x3xf32>
    %cst_17 = arith.constant dense<0.000000e+00> : vector<16x3xf32>
    %17 = tpu.matmul %15, %16, %cst_17 {dimension_numbers = #tpu.dot_dimension_numbers<[1], [0], [0], [1], [0, 0, 1, 1], [], []>} : vector<16x96xf32>, vector<96x3xf32>, vector<16x3xf32> -> vector<16x3xf32>
    %c0_18 = arith.constant 0 : index
    %c0_19 = arith.constant 0 : index
    %18 = vector.load %arg9[%c0_18, %c0_19] : memref<16x3xf32, #tpu.memory_space<vmem>>, vector<16x3xf32>
    tpu.vector_store %arg9[%c0_18, %c0_19], %17 {strides = array<i32>} : memref<16x3xf32, #tpu.memory_space<vmem>>, vector<16x3xf32>,
    return
  }
  func.func @transform_0(%arg0: i32) -> (i32, i32) {
    %c0_i32 = arith.constant 0 : i32
    %c0_i32_0 = arith.constant 0 : i32
    return %arg0, %c0_i32 : i32, i32
  }
  func.func @transform_1(%arg0: i32) -> (i32, i32) {
    %c0_i32 = arith.constant 0 : i32
    %c0_i32_0 = arith.constant 0 : i32
    return %arg0, %c0_i32 : i32, i32
  }
  func.func @transform_2(%arg0: i32) -> (i32, i32) {
    %c0_i32 = arith.constant 0 : i32
    %c0_i32_0 = arith.constant 0 : i32
    %c0_i32_1 = arith.constant 0 : i32
    return %c0_i32, %c0_i32_0 : i32, i32
  }
  func.func @transform_3(%arg0: i32) -> (i32, i32) {
    %c0_i32 = arith.constant 0 : i32
    %c0_i32_0 = arith.constant 0 : i32
    %c0_i32_1 = arith.constant 0 : i32
    return %c0_i32, %c0_i32_0 : i32, i32
  }
  func.func @transform_4(%arg0: i32) -> (i32, i32) {
    %c0_i32 = arith.constant 0 : i32
    %c0_i32_0 = arith.constant 0 : i32
    %c0_i32_1 = arith.constant 0 : i32
    return %c0_i32, %c0_i32_0 : i32, i32
  }
  func.func @transform_5(%arg0: i32) -> (i32, i32) {
    %c0_i32 = arith.constant 0 : i32
    %c0_i32_0 = arith.constant 0 : i32
    %c0_i32_1 = arith.constant 0 : i32
    return %c0_i32, %c0_i32_0 : i32, i32
  }
  func.func @transform_6(%arg0: i32) -> (i32, i32) {
    %c0_i32 = arith.constant 0 : i32
    %c0_i32_0 = arith.constant 0 : i32
    %c0_i32_1 = arith.constant 0 : i32
    return %c0_i32, %c0_i32_0 : i32, i32
  }
  func.func @transform_7(%arg0: i32) -> (i32, i32) {
    %c0_i32 = arith.constant 0 : i32
    %c0_i32_0 = arith.constant 0 : i32
    %c0_i32_1 = arith.constant 0 : i32
    return %c0_i32, %c0_i32_0 : i32, i32
  }
  func.func @transform_8(%arg0: i32) -> (i32, i32) {
    %c0_i32 = arith.constant 0 : i32
    %c0_i32_0 = arith.constant 0 : i32
    return %arg0, %c0_i32 : i32, i32
  }
}

</mosaic_0001>

<bundles_post_ra>
// kernel: tpu_custom_call.1
= control target key start
LH: loop header
LB: loop body
LE: loop exit
PB: predicated region body
PF: predicated region fallthrough
CT: control target
= control target key end

     0   :  { %13 = vsyncpa [#allocation3], 0  ;;  %s1305_s0 = inlined_call_operand.vmem [shape: f32[32,32], index: 0, kind: input, shape index: {}]   ;;  %s1306_s1 = inlined_call_operand.vmem [shape: f32[32,32], index: 1, kind: input, shape index: {}]   ;;  %s1307_s2 = inlined_call_operand.vmem [shape: f32[32,96], index: 2, kind: input, shape index: {}]   ;;  %s1308_s3 = inlined_call_operand.vmem [shape: f32[1,96], index: 3, kind: input, shape index: {}]   ;;  %s1309_s4 = inlined_call_operand.hbm [shape: f32[32,96], index: 4, kind: input, shape index: {}]   ;;  %s1310_s5 = inlined_call_operand.hbm [shape: f32[32,96], index: 5, kind: input, shape index: {}]   ;;  %s1311_s6 = inlined_call_operand.vmem [shape: f32[1,96], index: 6, kind: input, shape index: {}]   ;;  %s1312_s7 = inlined_call_operand.vmem [shape: f32[96,3], index: 7, kind: input, shape index: {}]   ;;  %s1313_s8 = inlined_call_operand.vmem [shape: f32[32,3], index: 8, kind: output, shape index: {}]  }
   0x1   :  { %14 = vsyncpa [#allocation5], 0  ;;  %s1141_s27 = smov 0  }
   0x2 LB: > { %s820_s28 = sadd.s32 4294967295, %s1090_s27   ;;  %p822_p0 = scmp.ge.s32.totalorder %s1090_s27, 1  ;;  %s1090_s27 = sphi %s1141_s27, %s20_s27  }
   0x3   : > { %p229_p1 = scmp.lt.s32.totalorder %s1090_s27, 3  ;;  %s1092_s29 = smov [#allocation2]  }
   0x4   : > { %s247_s30 = sshll.u32 %s1092_s29, 4  ;;  %p1155_p3 = scmp.eq.s32.totalorder %s820_s28, 0  ;;  %s248_s30 = int_to_ptr.vmem [resolvable:$true] %s247_s30 }
   0x5   : > { %p1149_p2 = pnand %p822_p0, %p229_p1  ;;  %s1093_s11 = smov [#allocation4]  }
   0x6   : > { %s1318_s10 = scalar_select %p1155_p3, 1, 0 }
   0x7   : > { %s1317_s9 = scalar_select %p1149_p2, 1, 0 }
   0x8   : > { %p997_p4 = pneg %p1149_p2  ;;  %s260_s12 = sshll.u32 %s1093_s11, 4  ;;  %s1167_s12 = int_to_ptr.vmem [resolvable:$true] %s260_s12 }
   0x9   : > { %s1020_s16 = scalar_lea.hbm %s1309_s4, 512 }
   0xa   : > { %p1163_p5 = pnand %p1155_p3, %p997_p4  ;;  %p1021_p6 = scmp.ne.s32.totalorder %s1309_s4, %s1020_s16 }
   0xb   : > { %p1027_p10 = scmp.lt.u32.totalorder %s1020_s16, %s1309_s4 }
   0xc   : > { %p1022_p7 = pneg %p1163_p5 }
   0xe   : > { %p1023_p8 = pnand %p1022_p7, %p1021_p6 }
  0x10   : > { %p1024_p9 = pneg %p1023_p8 }
  0x12   : > { %p1029_p11 = pnand %p1027_p10, %p1024_p9 }
  0x14   : > { %1032 = shalt.err (!%p1029_p11)
}
  0x15   : > { %s1033_s21 = scalar_lea.vmem %s248_s30, 512  ;;  %p1041_p1 = scmp.lt.s32.totalorder %s248_s30, %s248_s30 }
  0x16   : > { %p1034_p12 = scmp.ne.s32.totalorder %s248_s30, %s1033_s21  ;;  %p1042_p4 = scmp.lt.s32.totalorder %s1033_s21, %s1033_s21 }
  0x18   : > { %p1036_p13 = pnand %p1034_p12, %p1022_p7  ;;  %p1043_p3 = por %p1042_p4, %p1041_p1 }
  0x1a   : > { %p1037_p0 = pneg %p1036_p13 }
  0x1c   : > { %p1044_p2 = pnand %p1043_p3, %p1037_p0 }
  0x1e   : > { %1047 = shalt.err (!%p1044_p2)
}
  0x1f   : > { %s1094_s22 = smov 128   ;;  %s1095_s23 = smov 8  }
  0x20   : > { %1000 = dma.hbm_to_vmem [thread:$0]  (!%p1163_p5), %s1309_s4, 512, %s248_s30, [#allocation3], %s1094_s22, %s1094_s22, %s1095_s23  }
  0x21   : > { %s1048_s11 = scalar_lea.hbm %s1310_s5, 512 }
  0x22   : > { %p1049_p6 = scmp.ne.s32.totalorder %s1310_s5, %s1048_s11  ;;  %p1055_p8 = scmp.lt.u32.totalorder %s1048_s11, %s1310_s5 }
  0x24   : > { %p1051_p2 = pnand %p1049_p6, %p1022_p7 }
  0x26   : > { %p1052_p3 = pneg %p1051_p2 }
  0x28   : > { %p1057_p9 = pnand %p1055_p8, %p1052_p3 }
  0x2a   : > { %1060 = shalt.err (!%p1057_p9)
}
  0x2b   : > { %s1061_s30 = scalar_lea.vmem %s1167_s12, 512  ;;  %p1069_p13 = scmp.lt.s32.totalorder %s1167_s12, %s1167_s12 }
  0x2c   : > { %p1062_p10 = scmp.ne.s32.totalorder %s1167_s12, %s1061_s30  ;;  %p1070_p0 = scmp.lt.s32.totalorder %s1061_s30, %s1061_s30 }
  0x2e   : > { %p1064_p11 = pnand %p1062_p10, %p1022_p7  ;;  %p1071_p1 = por %p1070_p0, %p1069_p13 }
  0x30   : > { %p1065_p12 = pneg %p1064_p11 }
  0x32   : > { %p1072_p4 = pnand %p1071_p1, %p1065_p12 }
  0x34   : > { %1075 = shalt.err (!%p1072_p4)
}
  0x35   : > { %1003 = dma.hbm_to_vmem [thread:$0]  (!%p1163_p5), %s1310_s5, 512, %s1167_s12, [#allocation5], %s1094_s22, %s1094_s22, %s1095_s23  }
  0x36   : > { %p1320_p6 = scmp.ne.s32.totalorder %s1317_s9, 0 }
  0x37   : > { %p1321_p2 = scmp.ne.s32.totalorder (!%p1320_p6), %s1318_s10, 0 }
  0x38   : > { %300 = sbr.rel (%p1320_p6) target bundleno = 525 (0x20d), region = 52 }
  0x3f   : > { %1081 = dma.done.wait (%p1321_p2), [#allocation3], 512  }
  0x40   : > { %1083 = vsyncadd (%p1321_p2), [#allocation3], 4294966784 }
  0x41   : > { %1085 = dma.done.wait (%p1321_p2), [#allocation5], 512  }
  0x42   : > { %1087 = vsyncadd (%p1321_p2), [#allocation5], 4294966784  ;;  %s829_s13 = sshll.u32 %s820_s28, 1  ;;  %vm376_vm0 = vcmask 261120   ;;  %v365_v0 = vld [vmem:[%s1307_s2] sm:$0xff]  ;;  %v366_v1 = vld [vmem:[%s1307_s2 + $0x8] sm:$0xff] }
  0x43   : > { %p344_p7 = scmp.lt.s32.totalorder %s829_s13, 3  ;;  %v367_v2 = vld [vmem:[%s1307_s2 + $0x10] sm:$0xff]  ;;  %v939_v3 = vpack.c.bf16 %v366_v1, %v365_v0  ;;  %v368_v4 = vld [vmem:[%s1307_s2 + $0x18] sm:$0xff]  ;;  %v462_v7 = vld [vmem:[#allocation4] sm:$0xff]  ;;  %vm645_vm1 = vcmask 785408   ;;  %vm727_vm2 = vcmask 23552  }
  0x44   : > { %v943_v6 = vpack.c.bf16 %v368_v4, %v367_v2  ;;  %v463_v8 = vld [vmem:[#allocation4 + $0x8] sm:$0xff]  ;;  %v633_v10 = vld [vmem:[%s1312_s7] sm:$0xff]  ;;  %v464_v12 = vld [vmem:[#allocation4 + $0x10] sm:$0xff] }
  0x45   : > { %s1323_s13 = smov (!%p344_p7, %s829_s13), 3  ;;  %940 = vmatprep.subr.bf16.mxu1 %v939_v3  ;;  %v947_v9 = vpack.c.bf16 %v463_v8, %v462_v7  ;;  %v634_v11 = vld [vmem:[%s1312_s7 + $0x8] sm:$0xff]  ;;  %v465_v13 = vld [vmem:[#allocation4 + $0x18] sm:$0xff]  ;;  %v458_v18 = vld [vmem:[#allocation2] sm:$0xff] }
  0x46   : > { %s1228_s12 = sshll.u32 %s1323_s13, 3  ;;  %942 = vmatpush3.bf16.msra.mxu1 %v939_v3  ;;  %v963_v14 = vpack.c.bf16 %v634_v11, %v633_v10  ;;  %v951_v16 = vpack.c.bf16 %v465_v13, %v464_v12  ;;  %v459_v19 = vld [vmem:[#allocation2 + $0x8] sm:$0xff]  ;;  %v460_v21 = vld [vmem:[#allocation2 + $0x10] sm:$0xff]  ;;  %v461_v22 = vld [vmem:[#allocation2 + $0x18] sm:$0xff] }
  0x47   : > { %s347_s21 = scalar_lea.vmem %s1305_s0, %s1228_s12  ;;  %944 = vmatprep.subr.bf16.mxu1 %v943_v6  ;;  %s353_s18 = scalar_lea.vmem %s1306_s1, %s1228_s12  ;;  %v955_v20 = vpack.c.bf16 %v459_v19, %v458_v18  ;;  %v959_v24 = vpack.c.bf16 %v461_v22, %v460_v21  ;;  %v635_v25 = vld [vmem:[%s1312_s7 + $0x10] sm:$0xff]  ;;  %v636_v26 = vld [vmem:[%s1312_s7 + $0x18] sm:$0xff]  ;;  %v637_v28 = vld [vmem:[%s1312_s7 + $0x20] sm:$0xff] }
  0x48   : > { %v361_v5 = vld [vmem:[%s347_s21] sm:$0xff]  ;;  %v362_v15 = vld [vmem:[%s347_s21 + $0x8] sm:$0xff]  ;;  %964 = vmatprep.subr.bf16.mxu0 %v963_v14  ;;  %v967_v27 = vpack.c.bf16 %v636_v26, %v635_v25  ;;  %v639_v30 = vld [vmem:[%s1312_s7 + $0x30] sm:$0xff]  ;;  %s359_s23 = scalar_lea.vmem %s1313_s8, %s1228_s12 }
  0x49   : > { %887 = vmatprep.mubr.msk.f32.mxu1 %vm376_vm0, %v361_v5  ;;  %v363_v17 = vld [vmem:[%s353_s18] sm:$0xff]  ;;  %966 = vmatpush3.bf16.msra.mxu0 %v963_v14  ;;  %v364_v23 = vld [vmem:[%s353_s18 + $0x8] sm:$0xff]  ;;  %v640_v32 = vld [vmem:[%s1312_s7 + $0x38] sm:$0xff] }
  0x4a   : > { %946 = vmatpush3.bf16.msra.mxu1 %v943_v6  ;;  %v638_v29 = vld [vmem:[%s1312_s7 + $0x28] sm:$0xff]  ;;  %968 = vmatprep.subr.bf16.mxu0 %v967_v27  ;;  %v975_v33 = vpack.c.bf16 %v640_v32, %v639_v30  ;;  %v641_v34 = vld [vmem:[%s1312_s7 + $0x40] sm:$0xff]  ;;  %v643_v37 = vld [vmem:[%s1312_s7 + $0x50] sm:$0xff] }
  0x4b   : > { %948 = vmatprep.subr.bf16.mxu1 %v947_v9  ;;  %v971_v31 = vpack.c.bf16 %v638_v29, %v637_v28  ;;  %v642_v35 = vld [vmem:[%s1312_s7 + $0x48] sm:$0xff]  ;;  %v644_v38 = vld [vmem:[%s1312_s7 + $0x58] sm:$0xff]  ;;  %v835_v42 = vld [vmem:[%s1308_s3] ss:$0 sm:$0xff] }
  0x4c   : > { %v979_v36 = vpack.c.bf16 %v642_v35, %v641_v34  ;;  %v983_v39 = vpack.c.bf16 %v644_v38, %v643_v37  ;;  %v842_v43 = vld [vmem:[%s1311_s6] ss:$0 sm:$0xff] }
  0x4d   : > { %888 = vmatmul.mubr.msk.f32.vlgmr.msra.gmra.mrb[0].mxu1 %vm376_vm0, %v362_v15  ;;  %970 = vmatpush3.bf16.msra.mxu0 %v967_v27 }
  0x4e   : > { %950 = vmatpush3.bf16.msra.mxu1 %v947_v9  ;;  %898 = vmatprep.mubr.msk.f32.mxu1 %vm376_vm0, %v363_v17 }
  0x4f   : > { %952 = vmatprep.subr.bf16.mxu1 %v951_v16  ;;  %972 = vmatprep.subr.bf16.mxu0 %v971_v31 }
  0x51   : > { %974 = vmatpush3.bf16.msra.mxu0 %v971_v31 }
  0x52   : > { %954 = vmatpush3.bf16.msra.mxu1 %v951_v16  ;;  %976 = vmatprep.subr.bf16.mxu0 %v975_v33 }
  0x53   : > { %956 = vmatprep.subr.bf16.mxu1 %v955_v20 }
  0x55   : > { %899 = vmatmul.mubr.msk.f32.vlgmr.msra.gmra.mrb[2].mxu1 %vm376_vm0, %v364_v23  ;;  %978 = vmatpush3.bf16.msra.mxu0 %v975_v33 }
  0x56   : > { %958 = vmatpush3.bf16.msra.mxu1 %v955_v20  ;;  %909 = vmatprep.mubr.msk.f32.mxu1 %vm376_vm0, %v361_v5 }
  0x57   : > { %960 = vmatprep.subr.bf16.mxu1 %v959_v24  ;;  %980 = vmatprep.subr.bf16.mxu0 %v979_v36 }
  0x59   : > { %982 = vmatpush3.bf16.msra.mxu0 %v979_v36 }
  0x5a   : > { %962 = vmatpush3.bf16.msra.mxu1 %v959_v24  ;;  %984 = vmatprep.subr.bf16.mxu0 %v983_v39 }
  0x5d   : > { %910 = vmatmul.mubr.msk.f32.vlgmr.msra.gmra.mrb[2].mxu1 %vm376_vm0, %v362_v15  ;;  %986 = vmatpush3.bf16.msra.mxu0 %v983_v39 }
 0x120   : > { %v889_v40 = vpop.f32.mrb[0].mxu1 }
 0x121   : > { %v449_v41 = vpop.f32.mrb[1].mxu1  ;;  %v455_v45 = vadd.f32 %v889_v40, %v835_v42 }
 0x122   : > { %v450_v48 = vadd.f32 %v835_v42, %v449_v41 }
 0x130   : > { %v911_v44 = vpop.f32.mrb[2].mxu1 }
 0x131   : > { %v630_v46 = vadd.f32 %v911_v44, %v842_v43  ;;  %v613_v47 = vpop.f32.mrb[3].mxu1 }
 0x132   : > { %v629_v49 = vadd.f32 %v842_v43, %v613_v47 }
 0x133   : > { %v632_v50 = vmul.f32 %v630_v46, %v455_v45 }
 0x134   : > { %v631_v51 = vmul.f32 %v629_v49, %v450_v48 }
 0x136   : > { %936 = vmatprep.mubr.msk.f32.mxu0 %vm645_vm1, %v631_v51 }
 0x137   : > { %937 = vmatmul.mubr.msk.f32.vlgmr.msra.gmra.mrb[0].mxu0 %vm645_vm1, %v632_v50 }
 0x20a   : > { %v938_v52 = vpop.f32.mrb[0].mxu0 }
 0x20b   : > { %v718_v53 = vpop.f32.mrb[1].mxu0  ;;  %729 = vst.msk [vmem:[%s359_s23 + $0x8] sm:$0xff] %vm727_vm2, %v938_v52 }
 0x20c   : > { %728 = vst.msk [vmem:[%s359_s23] sm:$0xff] %vm727_vm2, %v718_v53 }
 0x20d PF: > { %s20_s27 = sadd.s32 1, %s1090_s27  }
 0x20e   : > { %p17_p5 = scmp.ge.s32.totalorder %s20_s27, 4  }
 0x210   :  { %19 = sbr.rel (!%p17_p5) target bundleno = 2 (0x2), region = 94 }
 0x217   :  { %752 = vsyncpa [#allocation3], 1 }
 0x218   :  { %754 = vsyncpa [#allocation3 + $0x1], 1 }
 0x219   :  { %755 = vsyncpa [#allocation5], 1 }

</bundles_post_ra>
